<compile_context>
chip_gen: v7x
topology: tpu7x:2x2x1
jax: 0.10.0
libtpu: 0.0.40
codegen_flags: <defaults>
</compile_context>

<pallas_src>
import jax
import jax.numpy as jnp
from jax.experimental import pallas as pl
from jax.experimental.pallas import tpu as pltpu

LANE = 128
SUBLANE = 8
NEG_BIAS = -1e9  # fill for padded logit columns -> exp() underflows to exactly 0


def _round_up(n, m):
    return ((n + m - 1) // m) * m


def actor_kernel(x_ref, w1_ref, b1_ref, w2_ref, b2_ref, w3_ref, b3_ref, out_ref):
    a_out = out_ref.shape[-1]                     # real action columns (static)
    # x arrives as f32 (no wrapper cast); cast to bf16 on the VPU for the MXU.
    x = x_ref[...].astype(jnp.bfloat16)
    # Layer 1: Linear (bf16 MXU operands, f32 accumulate) + ReLU
    h1 = jnp.dot(x, w1_ref[...], preferred_element_type=jnp.float32) + b1_ref[...]
    h1 = jnp.maximum(h1, 0.0).astype(jnp.bfloat16)
    # Layer 2: Linear + ReLU
    h2 = jnp.dot(h1, w2_ref[...], preferred_element_type=jnp.float32) + b2_ref[...]
    h2 = jnp.maximum(h2, 0.0).astype(jnp.bfloat16)
    # Output layer: Linear (padded logit columns carry bias = NEG_BIAS)
    logits = jnp.dot(h2, w3_ref[...], preferred_element_type=jnp.float32) + b3_ref[...]
    # Numerically-stable softmax over the last (action) dimension; padded lanes
    # contribute exactly 0 to the sum, so reducing over all 128 lanes is correct.
    m = jnp.max(logits, axis=-1, keepdims=True)
    e = jnp.exp(logits - m)
    s = jnp.sum(e, axis=-1, keepdims=True)
    r = pl.reciprocal(s, approx=True)             # EUP slot (free alongside exp)
    r = r * (2.0 - s * r)                         # one Newton step -> <1e-6 rel. error
    # Store only the real action columns: 8x less output HBM traffic than a
    # 128-lane-padded f32 writeback.
    out_ref[...] = (e[:, :a_out] * r).astype(out_ref.dtype)


def _vmem_budget(tile_b, state_dim, action_dim, params):
    """Rough VMEM footprint: 2x-buffered weights + x/out blocks + f32 intermediates."""
    w_bytes = sum(int(w.size) * w.dtype.itemsize + int(b.size) * b.dtype.itemsize
                  for w, b in params)
    io_bytes = 2 * (tile_b * state_dim * 4) + 2 * (tile_b * action_dim * 4)
    tmp_bytes = 6 * tile_b * LANE * 4
    return min(2 * w_bytes + io_bytes + tmp_bytes + (4 << 20), 64 << 20)


def actor_forward(x, params, action_dim, tile_b_max=2048):
    """x: [B, state_dim] f32; params: list of (w_bf16 [in_pad, out_pad], b_f32 [1, out_pad])."""
    (w1, b1), (w2, b2), (w3, b3) = params
    B, S = x.shape

    # Balanced batch tiling: waste capped at SUBLANE-1 rows/tile; use >=2 (even) grid
    # steps when B allows so the ("parallel",) axis can split across v7x's 2 TensorCores.
    n_tiles = max(pl.cdiv(B, tile_b_max), 2 if B >= 2 * SUBLANE else 1)
    if n_tiles > 1 and n_tiles % 2:
        n_tiles += 1
    tile_b = _round_up(pl.cdiv(B, n_tiles), SUBLANE)
    B_pad = n_tiles * tile_b
    if B_pad != B:
        x = jnp.pad(x, ((0, B_pad - B), (0, 0)))
    # NOTE: no wrapper-side bf16 cast of x -- the kernel casts on the VPU.

    const = lambda i: (0, 0)  # weights/biases: same block every step -> stay VMEM-resident
    out = pl.pallas_call(
        actor_kernel,
        out_shape=jax.ShapeDtypeStruct((B_pad, action_dim), jnp.float32),
        grid=(n_tiles,),
        in_specs=[
            pl.BlockSpec((tile_b, S), lambda i: (i, 0)),
            pl.BlockSpec(w1.shape, const), pl.BlockSpec(b1.shape, const),
            pl.BlockSpec(w2.shape, const), pl.BlockSpec(b2.shape, const),
            pl.BlockSpec(w3.shape, const), pl.BlockSpec(b3.shape, const),
        ],
        out_specs=pl.BlockSpec((tile_b, action_dim), lambda i: (i, 0)),
        compiler_params=pltpu.CompilerParams(
            dimension_semantics=("parallel",),           # shard batch over v7x's 2 TCs
            vmem_limit_bytes=_vmem_budget(tile_b, S, action_dim, params),
        ),
    )(x, w1, b1, w2, b2, w3, b3)
    return out if B_pad == B else out[:B]


def init_params(key, state_dim, action_dim, hidden_sizes=(128, 64)):
    """PyTorch-Linear-style U(-1/sqrt(fan_in), 1/sqrt(fan_in)) init, then lane-pad to 128.

    Returns a list of (weight[in_pad, out_pad] bf16, bias[1, out_pad] f32). Padded weight
    rows/cols are zero; padded bias entries are zero except the final layer, where they
    are NEG_BIAS so padded logits drop out of the softmax.
    """
    dims = [state_dim] + list(hidden_sizes) + [action_dim]
    n_layers = len(dims) - 1
    params = []
    prev_pad = state_dim  # state_dim left unpadded (full-dim block is legal)
    for i in range(n_layers):
        fan_in, fan_out = dims[i], dims[i + 1]
        out_pad = _round_up(fan_out, LANE)
        key, kw, kb = jax.random.split(key, 3)
        bound = 1.0 / (fan_in ** 0.5)
        w = jax.random.uniform(kw, (fan_in, fan_out), jnp.float32, minval=-bound, maxval=bound)
        b = jax.random.uniform(kb, (fan_out,), jnp.float32, minval=-bound, maxval=bound)
        w_p = jnp.zeros((prev_pad, out_pad), jnp.float32).at[:fan_in, :fan_out].set(w)
        bias_fill = NEG_BIAS if i == n_layers - 1 else 0.0
        b_p = jnp.full((1, out_pad), bias_fill, jnp.float32).at[0, :fan_out].set(b)
        params.append((w_p.astype(jnp.bfloat16), b_p))
        prev_pad = out_pad
    return params


def reference_forward(x, params, action_dim):
    """Pure-JAX reference with the same dtype flow (bf16 matmul operands, f32 accum)."""
    (w1, b1), (w2, b2), (w3, b3) = params
    xb = x.astype(jnp.bfloat16)
    h1 = jnp.maximum(jnp.dot(xb, w1, preferred_element_type=jnp.float32) + b1, 0.0).astype(jnp.bfloat16)
    h2 = jnp.maximum(jnp.dot(h1, w2, preferred_element_type=jnp.float32) + b2, 0.0).astype(jnp.bfloat16)
    logits = jnp.dot(h2, w3, preferred_element_type=jnp.float32) + b3
    return jax.nn.softmax(logits, axis=-1)[:, :action_dim]


# TODO(synk): select_action's env-dependent action masking and Categorical sampling, and
# get_log_prob, are host-side control flow; only the forward pass is implemented as a kernel.

if __name__ == "__main__":
    key = jax.random.PRNGKey(0)
    batch, state_dim, action_dim = 2, 32, 16
    hidden_sizes = (128, 64)

    key, kx = jax.random.split(key)
    x = jax.random.normal(kx, (batch, state_dim), jnp.float32)
    params = init_params(key, state_dim, action_dim, hidden_sizes)

    probs = jax.block_until_ready(actor_forward(x, params, action_dim))

    # sanity: shape, softmax rows sum to 1, matches pure-JAX reference
    assert probs.shape == (batch, action_dim)
    row_sums = jnp.sum(probs, axis=-1)
    assert jnp.allclose(row_sums, jnp.ones_like(row_sums), atol=1e-3)
    ref = reference_forward(x, params, action_dim)
    assert jnp.allclose(probs, ref, atol=2e-3), float(jnp.max(jnp.abs(probs - ref)))
    print("KERNEL_OK")
</pallas_src>

<mosaic_0001>
module attributes {stable_mosaic.version = 11 : i64} {
  func.func @actor_kernel(%arg0: i32, %arg1: memref<8x32xf32, #tpu.memory_space<vmem>>, %arg2: memref<32x128xbf16, #tpu.memory_space<vmem>>, %arg3: memref<1x128xf32, #tpu.memory_space<vmem>>, %arg4: memref<128x128xbf16, #tpu.memory_space<vmem>>, %arg5: memref<1x128xf32, #tpu.memory_space<vmem>>, %arg6: memref<128x128xbf16, #tpu.memory_space<vmem>>, %arg7: memref<1x128xf32, #tpu.memory_space<vmem>>, %arg8: memref<8x16xf32, #tpu.memory_space<vmem>>) attributes {dimension_semantics = [#tpu.dimension_semantics<parallel>], iteration_bounds = array<i64: 1>, scalar_prefetch = 0 : i64, scratch_operands = 0 : i64, tpu.core_type = #tpu.core_type<tc>, window_params = [{transform_indices = @transform_0, window_bounds = array<i64: 8, 32>}, {pipeline_mode = #tpu.pipeline_mode<synchronous>, transform_indices = @transform_1, window_bounds = array<i64: 32, 128>}, {pipeline_mode = #tpu.pipeline_mode<synchronous>, transform_indices = @transform_2, window_bounds = array<i64: 1, 128>}, {pipeline_mode = #tpu.pipeline_mode<synchronous>, transform_indices = @transform_3, window_bounds = array<i64: 128, 128>}, {pipeline_mode = #tpu.pipeline_mode<synchronous>, transform_indices = @transform_4, window_bounds = array<i64: 1, 128>}, {pipeline_mode = #tpu.pipeline_mode<synchronous>, transform_indices = @transform_5, window_bounds = array<i64: 128, 128>}, {pipeline_mode = #tpu.pipeline_mode<synchronous>, transform_indices = @transform_6, window_bounds = array<i64: 1, 128>}, {transform_indices = @transform_7, window_bounds = array<i64: 8, 16>}]} {
    %c0 = arith.constant 0 : index
    %c0_0 = arith.constant 0 : index
    %0 = vector.load %arg1[%c0, %c0_0] : memref<8x32xf32, #tpu.memory_space<vmem>>, vector<8x32xf32>
    %1 = arith.truncf %0 : vector<8x32xf32> to vector<8x32xbf16>
    %c0_1 = arith.constant 0 : index
    %c0_2 = arith.constant 0 : index
    %2 = vector.load %arg2[%c0_1, %c0_2] : memref<32x128xbf16, #tpu.memory_space<vmem>>, vector<32x128xbf16>
    %cst = arith.constant dense<0.000000e+00> : vector<8x128xf32>
    %3 = tpu.matmul %1, %2, %cst {dimension_numbers = #tpu.dot_dimension_numbers<[1], [0], [0], [1], [0, 0, 1, 1], [], []>} : vector<8x32xbf16>, vector<32x128xbf16>, vector<8x128xf32> -> vector<8x128xf32>
    %c0_3 = arith.constant 0 : index
    %c0_4 = arith.constant 0 : index
    %4 = vector.load %arg3[%c0_3, %c0_4] : memref<1x128xf32, #tpu.memory_space<vmem>>, vector<1x128xf32>
    %5 = vector.broadcast %4 : vector<1x128xf32> to vector<8x128xf32>
    %6 = arith.addf %3, %5 : vector<8x128xf32>
    %cst_5 = arith.constant 0.000000e+00 : f32
    %7 = vector.broadcast %cst_5 : f32 to vector<8x128xf32>
    %8 = arith.maximumf %6, %7 : vector<8x128xf32>
    %9 = arith.truncf %8 : vector<8x128xf32> to vector<8x128xbf16>
    %c0_6 = arith.constant 0 : index
    %c0_7 = arith.constant 0 : index
    %10 = vector.load %arg4[%c0_6, %c0_7] : memref<128x128xbf16, #tpu.memory_space<vmem>>, vector<128x128xbf16>
    %cst_8 = arith.constant dense<0.000000e+00> : vector<8x128xf32>
    %11 = tpu.matmul %9, %10, %cst_8 {dimension_numbers = #tpu.dot_dimension_numbers<[1], [0], [0], [1], [0, 0, 1, 1], [], []>} : vector<8x128xbf16>, vector<128x128xbf16>, vector<8x128xf32> -> vector<8x128xf32>
    %c0_9 = arith.constant 0 : index
    %c0_10 = arith.constant 0 : index
    %12 = vector.load %arg5[%c0_9, %c0_10] : memref<1x128xf32, #tpu.memory_space<vmem>>, vector<1x128xf32>
    %13 = vector.broadcast %12 : vector<1x128xf32> to vector<8x128xf32>
    %14 = arith.addf %11, %13 : vector<8x128xf32>
    %cst_11 = arith.constant 0.000000e+00 : f32
    %15 = vector.broadcast %cst_11 : f32 to vector<8x128xf32>
    %16 = arith.maximumf %14, %15 : vector<8x128xf32>
    %17 = arith.truncf %16 : vector<8x128xf32> to vector<8x128xbf16>
    %c0_12 = arith.constant 0 : index
    %c0_13 = arith.constant 0 : index
    %18 = vector.load %arg6[%c0_12, %c0_13] : memref<128x128xbf16, #tpu.memory_space<vmem>>, vector<128x128xbf16>
    %cst_14 = arith.constant dense<0.000000e+00> : vector<8x128xf32>
    %19 = tpu.matmul %17, %18, %cst_14 {dimension_numbers = #tpu.dot_dimension_numbers<[1], [0], [0], [1], [0, 0, 1, 1], [], []>} : vector<8x128xbf16>, vector<128x128xbf16>, vector<8x128xf32> -> vector<8x128xf32>
    %c0_15 = arith.constant 0 : index
    %c0_16 = arith.constant 0 : index
    %20 = vector.load %arg7[%c0_15, %c0_16] : memref<1x128xf32, #tpu.memory_space<vmem>>, vector<1x128xf32>
    %21 = vector.broadcast %20 : vector<1x128xf32> to vector<8x128xf32>
    %22 = arith.addf %19, %21 : vector<8x128xf32>
    %cst_17 = arith.constant dense<0xFF800000> : vector<8xf32>
    %23 = vector.multi_reduction <maximumf>, %22, %cst_17 [1] : vector<8x128xf32> to vector<8xf32>
    %24 = vector.shape_cast %23 : vector<8xf32> to vector<8x1xf32>
    %25 = vector.broadcast %24 : vector<8x1xf32> to vector<8x128xf32>
    %26 = arith.subf %22, %25 : vector<8x128xf32>
    %27 = math.exp %26 : vector<8x128xf32>
    %cst_18 = arith.constant dense<0.000000e+00> : vector<8xf32>
    %28 = vector.multi_reduction <add>, %27, %cst_18 [1] : vector<8x128xf32> to vector<8xf32>
    %29 = vector.shape_cast %28 : vector<8xf32> to vector<8x1xf32>
    %30 = tpu.reciprocal %29 {approx = true} : vector<8x1xf32> -> vector<8x1xf32>
    %31 = arith.mulf %29, %30 : vector<8x1xf32>
    %cst_19 = arith.constant 2.000000e+00 : f32
    %32 = vector.broadcast %cst_19 : f32 to vector<8x1xf32>
    %33 = arith.subf %32, %31 : vector<8x1xf32>
    %34 = arith.mulf %30, %33 : vector<8x1xf32>
    %35 = vector.extract_strided_slice %27 {offsets = [0, 0], sizes = [8, 16], strides = [1, 1]} : vector<8x128xf32> to vector<8x16xf32>
    %36 = vector.broadcast %34 : vector<8x1xf32> to vector<8x16xf32>
    %37 = arith.mulf %35, %36 : vector<8x16xf32>
    %c0_20 = arith.constant 0 : index
    %c0_21 = arith.constant 0 : index
    %38 = vector.load %arg8[%c0_20, %c0_21] : memref<8x16xf32, #tpu.memory_space<vmem>>, vector<8x16xf32>
    tpu.vector_store %arg8[%c0_20, %c0_21], %37 {strides = array<i32>} : memref<8x16xf32, #tpu.memory_space<vmem>>, vector<8x16xf32>,
    return
  }
  func.func @transform_0(%arg0: i32) -> (i32, i32) {
    %c0_i32 = arith.constant 0 : i32
    %c0_i32_0 = arith.constant 0 : i32
    return %arg0, %c0_i32 : i32, i32
  }
  func.func @transform_1(%arg0: i32) -> (i32, i32) {
    %c0_i32 = arith.constant 0 : i32
    %c0_i32_0 = arith.constant 0 : i32
    %c0_i32_1 = arith.constant 0 : i32
    return %c0_i32, %c0_i32_0 : i32, i32
  }
  func.func @transform_2(%arg0: i32) -> (i32, i32) {
    %c0_i32 = arith.constant 0 : i32
    %c0_i32_0 = arith.constant 0 : i32
    %c0_i32_1 = arith.constant 0 : i32
    return %c0_i32, %c0_i32_0 : i32, i32
  }
  func.func @transform_3(%arg0: i32) -> (i32, i32) {
    %c0_i32 = arith.constant 0 : i32
    %c0_i32_0 = arith.constant 0 : i32
    %c0_i32_1 = arith.constant 0 : i32
    return %c0_i32, %c0_i32_0 : i32, i32
  }
  func.func @transform_4(%arg0: i32) -> (i32, i32) {
    %c0_i32 = arith.constant 0 : i32
    %c0_i32_0 = arith.constant 0 : i32
    %c0_i32_1 = arith.constant 0 : i32
    return %c0_i32, %c0_i32_0 : i32, i32
  }
  func.func @transform_5(%arg0: i32) -> (i32, i32) {
    %c0_i32 = arith.constant 0 : i32
    %c0_i32_0 = arith.constant 0 : i32
    %c0_i32_1 = arith.constant 0 : i32
    return %c0_i32, %c0_i32_0 : i32, i32
  }
  func.func @transform_6(%arg0: i32) -> (i32, i32) {
    %c0_i32 = arith.constant 0 : i32
    %c0_i32_0 = arith.constant 0 : i32
    %c0_i32_1 = arith.constant 0 : i32
    return %c0_i32, %c0_i32_0 : i32, i32
  }
  func.func @transform_7(%arg0: i32) -> (i32, i32) {
    %c0_i32 = arith.constant 0 : i32
    %c0_i32_0 = arith.constant 0 : i32
    return %arg0, %c0_i32 : i32, i32
  }
}

</mosaic_0001>

<bundles_post_ra>
// kernel: tpu_custom_call.1
= control target key start
LH: loop header
LB: loop body
LE: loop exit
PB: predicated region body
PF: predicated region fallthrough
CT: control target
= control target key end

     0   :  { %12 = vsyncpa [#allocation3], 0  ;;  %s798_s0 = inlined_call_operand.hbm [shape: f32[8,32], index: 0, kind: input, shape index: {}]   ;;  %s799_s1 = inlined_call_operand.hbm [shape: bf16[32,128], index: 1, kind: input, shape index: {}]   ;;  %s800_s2 = inlined_call_operand.vmem [shape: f32[1,128], index: 2, kind: input, shape index: {}]   ;;  %s801_s3 = inlined_call_operand.hbm [shape: bf16[128,128], index: 3, kind: input, shape index: {}]   ;;  %s802_s4 = inlined_call_operand.vmem [shape: f32[1,128], index: 4, kind: input, shape index: {}]   ;;  %s803_s5 = inlined_call_operand.hbm [shape: bf16[128,128], index: 5, kind: input, shape index: {}]   ;;  %s804_s6 = inlined_call_operand.vmem [shape: f32[1,128], index: 6, kind: input, shape index: {}]   ;;  %s805_s7 = inlined_call_operand.hbm [shape: f32[8,16], index: 7, kind: output, shape index: {}]  }
   0x1   :  { %13 = vsyncpa [#allocation6], 0 }
   0x2   :  { %14 = vsyncpa [#allocation9], 0 }
   0x3   :  { %15 = vsyncpa [#allocation4], 0  ;;  %s647_s24 = smov [#allocation5]   ;;  %s529_s28 = scalar_lea.hbm %s799_s1, 256 }
   0x4   :  { %s31_s25 = sshll.u32 %s647_s24, 4  ;;  %p530_p0 = scmp.ne.s32.totalorder %s799_s1, %s529_s28  ;;  %s32_s25 = int_to_ptr.vmem [resolvable:$true] %s31_s25 }
   0x5   :  { %p533_p1 = scmp.lt.u32.totalorder %s529_s28, %s799_s1 }
   0x7   :  { %p535_p2 = pnand %p533_p1, %p530_p0 }
   0x9   :  { %538 = shalt.err (!%p535_p2)
}
   0xa   :  { %s539_s10 = scalar_lea.vmem %s32_s25, 256  ;;  %p544_p4 = scmp.lt.s32.totalorder %s32_s25, %s32_s25 }
   0xb   :  { %p540_p3 = scmp.ne.s32.totalorder %s32_s25, %s539_s10  ;;  %p545_p5 = scmp.lt.s32.totalorder %s539_s10, %s539_s10 }
   0xd   :  { %p546_p6 = por %p545_p5, %p544_p4 }
   0xf   :  { %p547_p7 = pnand %p546_p6, %p540_p3 }
  0x11   :  { %550 = shalt.err (!%p547_p7)
}
  0x12   :  { %s648_s11 = smov 64   ;;  %s649_s12 = smov 4  }
  0x13   :  { %37 = dma.hbm_to_vmem [thread:$0]  %s799_s1, 256, %s32_s25, [#allocation6], %s648_s11, %s648_s11, %s649_s12  }
  0x14   :  { %s650_s15 = smov [#allocation2]   ;;  %s651_s17 = smov [#allocation7]  }
  0x15   :  { %s22_s16 = sshll.u32 %s650_s15, 4  ;;  %s45_s18 = sshll.u32 %s651_s17, 4  ;;  %s23_s16 = int_to_ptr.vmem [resolvable:$true] %s22_s16  ;;  %s46_s18 = int_to_ptr.vmem [resolvable:$true] %s45_s18 }
  0x16   :  { %s551_s21 = scalar_lea.hbm %s798_s0, 128 }
  0x17   :  { %p552_p8 = scmp.ne.s32.totalorder %s798_s0, %s551_s21  ;;  %p555_p9 = scmp.lt.u32.totalorder %s551_s21, %s798_s0 }
  0x19   :  { %p557_p10 = pnand %p555_p9, %p552_p8 }
  0x1b   :  { %560 = shalt.err (!%p557_p10)
}
  0x1c   :  { %s561_s1 = scalar_lea.vmem %s23_s16, 128  ;;  %p566_p12 = scmp.lt.s32.totalorder %s23_s16, %s23_s16 }
  0x1d   :  { %p562_p11 = scmp.ne.s32.totalorder %s23_s16, %s561_s1  ;;  %p567_p13 = scmp.lt.s32.totalorder %s561_s1, %s561_s1 }
  0x1f   :  { %p568_p0 = por %p567_p13, %p566_p12 }
  0x21   :  { %p569_p1 = pnand %p568_p0, %p562_p11 }
  0x23   :  { %572 = shalt.err (!%p569_p1)
}
  0x24   :  { %25 = dma.hbm_to_vmem [thread:$0]  %s798_s0, 128, %s23_s16, [#allocation3]  }
  0x25   :  { %s573_s30 = scalar_lea.hbm %s801_s3, 1024 }
  0x26   :  { %p574_p2 = scmp.ne.s32.totalorder %s801_s3, %s573_s30  ;;  %p577_p3 = scmp.lt.u32.totalorder %s573_s30, %s801_s3 }
  0x28   :  { %p579_p4 = pnand %p577_p3, %p574_p2 }
  0x2a   :  { %582 = shalt.err (!%p579_p4)
}
  0x2b   :  { %s583_s14 = scalar_lea.vmem %s46_s18, 1024  ;;  %p588_p6 = scmp.lt.s32.totalorder %s46_s18, %s46_s18 }
  0x2c   :  { %p584_p5 = scmp.ne.s32.totalorder %s46_s18, %s583_s14  ;;  %p589_p7 = scmp.lt.s32.totalorder %s583_s14, %s583_s14 }
  0x2e   :  { %p590_p8 = por %p589_p7, %p588_p6 }
  0x30   :  { %p591_p9 = pnand %p590_p8, %p584_p5 }
  0x32   :  { %594 = shalt.err (!%p591_p9)
}
  0x33   :  { %51 = dma.hbm_to_vmem [thread:$0]  %s801_s3, 1024, %s46_s18, [#allocation6], %s648_s11, %s648_s11, %s649_s12  }
  0x34   :  { %s652_s16 = smov [#allocation8]   ;;  %s595_s21 = scalar_lea.hbm %s803_s5, 1024 }
  0x35   :  { %s59_s17 = sshll.u32 %s652_s16, 4  ;;  %p596_p10 = scmp.ne.s32.totalorder %s803_s5, %s595_s21  ;;  %s60_s17 = int_to_ptr.vmem [resolvable:$true] %s59_s17 }
  0x36   :  { %p599_p11 = scmp.lt.u32.totalorder %s595_s21, %s803_s5 }
  0x38   :  { %p601_p12 = pnand %p599_p11, %p596_p10 }
  0x3a   :  { %604 = shalt.err (!%p601_p12)
}
  0x3b   :  { %s605_s1 = scalar_lea.vmem %s60_s17, 1024  ;;  %p610_p0 = scmp.lt.s32.totalorder %s60_s17, %s60_s17 }
  0x3c   :  { %p606_p13 = scmp.ne.s32.totalorder %s60_s17, %s605_s1  ;;  %p611_p1 = scmp.lt.s32.totalorder %s605_s1, %s605_s1 }
  0x3e   :  { %p612_p2 = por %p611_p1, %p610_p0 }
  0x40   :  { %p613_p3 = pnand %p612_p2, %p606_p13 }
  0x42   :  { %616 = shalt.err (!%p613_p3)
}
  0x43   :  { %65 = dma.hbm_to_vmem [thread:$0]  %s803_s5, 1024, %s60_s17, [#allocation9], %s648_s11, %s648_s11, %s649_s12  }
  0x44   :  { %639 = dma.done.wait [#allocation3], 128  }
  0x45   :  { %640 = vsyncadd [#allocation3], 4294967168 }
  0x46   :  { %641 = dma.done.wait [#allocation6], 1280  }
  0x47   :  { %642 = vsyncadd [#allocation6], 4294966016 }
  0x48   :  { %643 = dma.done.wait [#allocation9], 1024  }
  0x49   :  { %644 = vsyncadd [#allocation9], 4294966272  ;;  %v653_v0 = vmov 0.0   ;;  %vm654_vm0 = vmmov 0   ;;  %v507_v1 = vld [vmem:[#allocation5] sm:$0xff]   ;;  %v508_v2 = vld [vmem:[#allocation5 + $0x8] sm:$0xff]  }
  0x4a   :  { %450 = vmatprep.subr.bf16.mxu0 %v653_v0  ;;  %454 = vmatprep.mubr.msk.bf16.mxu0 %vm654_vm0, %v653_v0  ;;  %v81_v3 = vld [vmem:[#allocation2] sm:$0xff]  ;;  %v509_v4 = vld [vmem:[#allocation7] sm:$0xff]   ;;  %vm106_vm1 = vcmask 261120   ;;  %v511_v7 = vld [vmem:[#allocation7 + $0x10] sm:$0xff]   ;;  %vm388_vm2 = vcmask 130048  }
  0x4b   :  { %458 = vmatprep.subr.bf16.mxu1 %v653_v0  ;;  %474 = vmatprep.mubr.msk.bf16.mxu1 %vm654_vm0, %v653_v0  ;;  %v82_v5 = vpack.c.bf16 %v81_v3, %v81_v3  ;;  %v510_v6 = vld [vmem:[#allocation7 + $0x8] sm:$0xff]   ;;  %v512_v8 = vld [vmem:[#allocation7 + $0x18] sm:$0xff]   ;;  %v513_v9 = vld [vmem:[#allocation7 + $0x20] sm:$0xff]  }
  0x4c   :  { %451 = vmatpush3.bf16.msra.mxu0 %v507_v1  ;;  %459 = vmatpush3.bf16.msra.mxu1 %v509_v4  ;;  %v514_v10 = vld [vmem:[#allocation7 + $0x28] sm:$0xff]   ;;  %v515_v11 = vld [vmem:[#allocation7 + $0x30] sm:$0xff]   ;;  %v516_v12 = vld [vmem:[#allocation7 + $0x38] sm:$0xff]  }
  0x4d   :  { %452 = vmatprep.subr.bf16.mxu0 %v653_v0  ;;  %460 = vmatprep.subr.bf16.mxu1 %v653_v0  ;;  %v517_v13 = vld [vmem:[#allocation8] sm:$0xff]   ;;  %v518_v14 = vld [vmem:[#allocation8 + $0x8] sm:$0xff]   ;;  %v519_v15 = vld [vmem:[#allocation8 + $0x10] sm:$0xff]  }
  0x4e   :  { %v520_v16 = vld [vmem:[#allocation8 + $0x18] sm:$0xff]   ;;  %v521_v17 = vld [vmem:[#allocation8 + $0x20] sm:$0xff]   ;;  %v522_v18 = vld [vmem:[#allocation8 + $0x28] sm:$0xff]  }
  0x4f   :  { %v407_v19 = vld [vmem:[%s800_s2] ss:$0 sm:$0xff]  ;;  %v523_v27 = vld [vmem:[#allocation8 + $0x30] sm:$0xff]   ;;  %v524_v28 = vld [vmem:[#allocation8 + $0x38] sm:$0xff]  }
  0x50   :  { %453 = vmatpush3.bf16.msra.mxu0 %v508_v2  ;;  %461 = vmatpush3.bf16.msra.mxu1 %v510_v6  ;;  %v411_v29 = vld [vmem:[%s802_s4] ss:$0 sm:$0xff]  ;;  %s655_s4 = smov [#allocation10]  }
  0x51   :  { %478 = vmatprep.subr.bf16.mxu0 %v653_v0  ;;  %462 = vmatprep.subr.bf16.mxu1 %v653_v0  ;;  %v420_v37 = vld [vmem:[%s804_s6] ss:$0 sm:$0xff]  ;;  %s396_s28 = sshll.u32 %s655_s4, 4  ;;  %s397_s28 = int_to_ptr.vmem [resolvable:$true] %s396_s28 }
  0x52   :  { %s617_s6 = scalar_lea.vmem %s397_s28, 128  ;;  %p622_p5 = scmp.lt.s32.totalorder %s397_s28, %s397_s28 }
  0x53   :  { %455 = vmatmul.mubr.msk.bf16.vlgmr.msra.gmra.mrb[0].mxu0 %vm106_vm1, %v82_v5  ;;  %p618_p4 = scmp.ne.s32.totalorder %s397_s28, %s617_s6  ;;  %p623_p6 = scmp.lt.s32.totalorder %s617_s6, %s617_s6 }
  0x54   :  { %494 = vmatprep.mubr.msk.bf16.mxu0 %vm654_vm0, %v653_v0  ;;  %463 = vmatpush3.bf16.msra.mxu1 %v511_v7 }
  0x55   :  { %464 = vmatprep.subr.bf16.mxu1 %v653_v0  ;;  %479 = vmatpush3.bf16.msra.mxu0 %v517_v13  ;;  %p624_p7 = por %p623_p6, %p622_p5 }
  0x56   :  { %480 = vmatprep.subr.bf16.mxu0 %v653_v0 }
  0x57   :  { %p625_p8 = pnand %p624_p7, %p618_p4 }
  0x58   :  { %465 = vmatpush3.bf16.msra.mxu1 %v512_v8 }
  0x59   :  { %466 = vmatprep.subr.bf16.mxu1 %v653_v0  ;;  %481 = vmatpush3.bf16.msra.mxu0 %v518_v14 }
  0x5a   :  { %482 = vmatprep.subr.bf16.mxu0 %v653_v0 }
  0x5c   :  { %467 = vmatpush3.bf16.msra.mxu1 %v513_v9 }
  0x5d   :  { %468 = vmatprep.subr.bf16.mxu1 %v653_v0  ;;  %483 = vmatpush3.bf16.msra.mxu0 %v519_v15 }
  0x5e   :  { %484 = vmatprep.subr.bf16.mxu0 %v653_v0 }
  0x60   :  { %469 = vmatpush3.bf16.msra.mxu1 %v514_v10 }
  0x61   :  { %470 = vmatprep.subr.bf16.mxu1 %v653_v0  ;;  %485 = vmatpush3.bf16.msra.mxu0 %v520_v16 }
  0x62   :  { %486 = vmatprep.subr.bf16.mxu0 %v653_v0 }
  0x64   :  { %471 = vmatpush3.bf16.msra.mxu1 %v515_v11 }
  0x65   :  { %472 = vmatprep.subr.bf16.mxu1 %v653_v0  ;;  %487 = vmatpush3.bf16.msra.mxu0 %v521_v17 }
  0x66   :  { %488 = vmatprep.subr.bf16.mxu0 %v653_v0 }
  0x68   :  { %473 = vmatpush3.bf16.msra.mxu1 %v516_v12 }
  0x69   :  { %489 = vmatpush3.bf16.msra.mxu0 %v522_v18 }
  0x6a   :  { %490 = vmatprep.subr.bf16.mxu0 %v653_v0 }
  0x6d   :  { %491 = vmatpush3.bf16.msra.mxu0 %v523_v27 }
  0x6e   :  { %492 = vmatprep.subr.bf16.mxu0 %v653_v0 }
  0x71   :  { %493 = vmatpush3.bf16.msra.mxu0 %v524_v28 }
 0x126   :  { %v144_v20 = vpop.f32.mrb[0].mxu0 }
 0x127   :  { %v145_v21 = vadd.f32 %v407_v19, %v144_v20  ;;  %v456_v22 = vpop.f32.mrb[1].mxu0 }
 0x128   :  { %v147_v23 = vpop.f32.mrb[2].mxu0 }
 0x129   :  { %v150_v24 = vmax.f32 %v145_v21, 0.0  ;;  %v457_v25 = vpop.f32.mrb[3].mxu0 }
 0x12b   :  { %v151_v26 = vpack.c.bf16 %v150_v24, %v150_v24 }
 0x12d   :  { %475 = vmatmul.mubr.bf16.vlgmr.msra.gmra.mrb[0].mxu1 %v151_v26 }
 0x200   :  { %v257_v30 = vpop.f32.mrb[0].mxu1 }
 0x201   :  { %v258_v31 = vadd.f32 %v411_v29, %v257_v30  ;;  %v476_v32 = vpop.f32.mrb[1].mxu1 }
 0x202   :  { %v260_v33 = vpop.f32.mrb[2].mxu1 }
 0x203   :  { %v263_v34 = vmax.f32 %v258_v31, 0.0  ;;  %v477_v35 = vpop.f32.mrb[3].mxu1 }
 0x205   :  { %v264_v36 = vpack.c.bf16 %v263_v34, %v263_v34 }
 0x207   :  { %495 = vmatmul.mubr.bf16.vlgmr.msra.gmra.mrb[4].mxu0 %v264_v36 }
 0x2da   :  { %v370_v38 = vpop.f32.mrb[4].mxu0 }
 0x2db   :  { %v371_v39 = vadd.f32 %v420_v37, %v370_v38  ;;  %v496_v40 = vpop.f32.mrb[5].mxu0 }
 0x2dc   :  { %v373_v41 = vpop.f32.mrb[6].mxu0 }
 0x2dd   :  { %376 = vmax.xlane.f32.xlu0 %v371_v39  ;;  %v497_v42 = vpop.f32.mrb[7].mxu0 }
 0x36a   :  { %v377_v43 = vpop.xlane.xlu0 %376 }
 0x36b   :  { %v378_v44 = vsub.f32 %v371_v39, %v377_v43 }
 0x36d   :  { %v379_v45 = vmul.f32 1.442695, %v378_v44 }
 0x36f   :  { %525 = vpow2.f32 %v379_v45 }
 0x379   :  { %v526_v46 = vpop.eup %525 }
 0x37a   :  { %381 = vadd.xlane.f32.xlu0 %v526_v46 }
 0x407   :  { %v382_v47 = vpop.xlane.xlu0 %381 }
 0x408   :  { %527 = vrcp.f32 %v382_v47 }
 0x412   :  { %v528_v48 = vpop.eup %527 }
 0x413   :  { %v384_v49 = vmul.f32 %v528_v48, %v382_v47 }
 0x415   :  { %v385_v50 = vsub.f32 2.0, %v384_v49 }
 0x417   :  { %v386_v51 = vmul.f32 %v528_v48, %v385_v50 }
 0x419   :  { %v387_v52 = vmul.f32 %v526_v46, %v386_v51 }
 0x41b   :  { %389 = vst.msk [vmem:[#allocation10] sm:$0xff] %vm388_vm2, %v387_v52 }
 0x41c   :  { %628 = shalt.err (!%p625_p8)
}
 0x41d   :  { %s629_s8 = scalar_lea.hbm %s805_s7, 128 }
 0x41e   :  { %p630_p9 = scmp.ne.s32.totalorder %s805_s7, %s629_s8  ;;  %p633_p10 = scmp.lt.u32.totalorder %s629_s8, %s805_s7 }
 0x420   :  { %p635_p11 = pnand %p633_p10, %p630_p9 }
 0x422   :  { %638 = shalt.err (!%p635_p11)
}
 0x423   :  { %399 = dma.vmem_to_hbm [thread:$0]  %s397_s28, 128, %s805_s7, [#allocation4]  }
 0x424   :  { %645 = dma.done.wait [#allocation4], 128  }
 0x425   :  { %646 = vsyncadd [#allocation4], 4294967168 }
 0x426   :  { %403 = vsyncpa [#allocation3], 1 }
 0x427   :  { %404 = vsyncpa [#allocation6], 1 }
 0x428   :  { %405 = vsyncpa [#allocation9], 1 }
 0x429   :  { %406 = vsyncpa [#allocation4], 1 }

</bundles_post_ra>
